<compile_context>
chip_gen: v7x
topology: tpu7x:2x2x1
jax: 0.10.0
libtpu: 0.0.40
codegen_flags: <defaults>
</compile_context>

<pallas_src>
import functools

import jax
import jax.numpy as jnp
from jax.experimental import pallas as pl
from jax.experimental.pallas import tpu as pltpu


# ----------------------------------------------------------------------------
# Fused kernel: (hidden + context) -> reasoning_head -> output_projector
# grid = (B, num_seq_tiles, num_vocab_tiles), vocab axis innermost ("arbitrary")
# ----------------------------------------------------------------------------
def _reasoning_kernel(h_ref, ctx_ref, w_r_ref, b_r_ref, w_o_ref, b_o_ref,
                      logits_ref, reason_ref, r_scratch):
    j = pl.program_id(2)

    @pl.when(j == 0)
    def _():
        # (hidden + context) @ W_r + b_r, computed once per (batch, row-tile).
        x = h_ref[0] + ctx_ref[0]                               # [tm,H] + [1,H]
        r = jnp.dot(x, w_r_ref[...],
                    preferred_element_type=jnp.float32) + b_r_ref[...]
        r_scratch[...] = r
        reason_ref[0] = r.astype(reason_ref.dtype)

    r = r_scratch[...]                                          # f32 [tm, H]
    if r.dtype != w_o_ref.dtype:                                # bf16 MXU path
        r = r.astype(w_o_ref.dtype)
    lg = jnp.dot(r, w_o_ref[...],
                 preferred_element_type=jnp.float32) + b_o_ref[...]
    logits_ref[0] = lg.astype(logits_ref.dtype)


def _pick_tile(full, target, align):
    """Largest tile <= target that is either the full dim or `align`-aligned."""
    if full <= target:
        return full
    return max(align, (target // align) * align)


def reasoning_fused(hidden, ctx_feat, w_r, b_r, w_o, b_o, *, tm=None, tn=None):
    """hidden: [B,S,H], ctx_feat: [B,H] -> (logits [B,S,V], reasoning [B,S,H])."""
    B, S, H = hidden.shape
    V = w_o.shape[1]
    if tm is None:
        tm = _pick_tile(S, 256, 8)        # >=128 MXU rows whenever S allows
    if tn is None:
        tn = _pick_tile(V, 512, 128)      # lane-dense logits, v7x-VMEM friendly

    n_row_tiles = pl.cdiv(S, tm)
    n_voc_tiles = pl.cdiv(V, tn)
    grid = (B, n_row_tiles, n_voc_tiles)

    ctx3 = ctx_feat.reshape(B, 1, H)

    act_bytes = jnp.dtype(hidden.dtype).itemsize
    w_bytes = jnp.dtype(w_r.dtype).itemsize
    flops = 2 * B * S * H * (H + V)
    bytes_accessed = int(
        B * S * H * act_bytes                     # hidden in
        + B * H * act_bytes                       # context in
        + H * H * w_bytes                         # W_r (constant block)
        + B * n_row_tiles * H * V * w_bytes       # W_o re-streamed per row tile
        + B * S * V * act_bytes                   # logits out
        + B * S * H * act_bytes                   # reasoning out
    )

    # NOTE: weight/bias blocks have constant index maps; Mosaic only re-DMAs a
    # block when its index changes, so they are not re-fetched per grid step.
    return pl.pallas_call(
        _reasoning_kernel,
        out_shape=(
            jax.ShapeDtypeStruct((B, S, V), hidden.dtype),     # logits
            jax.ShapeDtypeStruct((B, S, H), hidden.dtype),     # reasoning_output
        ),
        grid_spec=pltpu.PrefetchScalarGridSpec(
            num_scalar_prefetch=0,
            grid=grid,
            in_specs=[
                pl.BlockSpec((1, tm, H), lambda b, i, j: (b, i, 0)),  # hidden
                pl.BlockSpec((1, 1, H), lambda b, i, j: (b, 0, 0)),   # context [B,1,H]
                pl.BlockSpec((H, H), lambda b, i, j: (0, 0)),         # W_reasoning
                pl.BlockSpec((1, H), lambda b, i, j: (0, 0)),         # b_reasoning
                pl.BlockSpec((H, tn), lambda b, i, j: (0, j)),        # W_output tile
                pl.BlockSpec((1, tn), lambda b, i, j: (0, j)),        # b_output tile
            ],
            out_specs=[
                pl.BlockSpec((1, tm, tn), lambda b, i, j: (b, i, j)),  # logits
                pl.BlockSpec((1, tm, H), lambda b, i, j: (b, i, 0)),   # reasoning
            ],
            scratch_shapes=[pltpu.VMEM((tm, H), jnp.float32)],
        ),
        compiler_params=pltpu.CompilerParams(
            dimension_semantics=("parallel", "parallel", "arbitrary")),
        cost_estimate=pl.CostEstimate(
            flops=flops, transcendentals=0, bytes_accessed=bytes_accessed),
    )(hidden, ctx3, w_r, b_r, w_o, b_o)


# ----------------------------------------------------------------------------
# Parameters (deterministic) and full forward pass
# ----------------------------------------------------------------------------
def make_params(key, vocab_size, hidden_size, num_concepts=10000):
    ks = jax.random.split(key, 6)
    s = 1.0 / float(hidden_size) ** 0.5

    def lin(k, din, dout):
        kw, kb = jax.random.split(k)
        w = jax.random.uniform(kw, (din, dout), jnp.float32, -s, s)
        b = jax.random.uniform(kb, (1, dout), jnp.float32, -s, s)
        return w, b

    return {
        "token_embedding": jax.random.normal(
            ks[0], (vocab_size, hidden_size), jnp.float32) * 0.02,
        "concept_embedding": jax.random.normal(
            ks[1], (num_concepts, hidden_size), jnp.float32) * 0.02,
        "context": lin(ks[2], hidden_size, hidden_size),
        "reasoning": lin(ks[3], hidden_size, hidden_size),
        "output": lin(ks[4], hidden_size, vocab_size),
    }


def common_sense_reasoning_forward(params, input_ids, concept_ids=None,
                                   attention_mask=None, *, compute_dtype=None,
                                   tm=None, tn=None):
    """Returns (logits [B,S,V], reasoning_output [B,S,H])."""
    B, S = input_ids.shape
    emb = params["token_embedding"]
    V, H = emb.shape

    # --- base model (glue; BaseModel unspecified in reference) ---
    hidden_states = emb[input_ids]            # [B, S, H]
    pooled = hidden_states.mean(axis=1)       # [B, H] (unused downstream)
    del pooled, attention_mask

    # --- concept embeddings + context_processor: tiny [B,H] matmul -> XLA ---
    if concept_ids is not None:
        w_ctx, b_ctx = params["context"]
        concept_context = params["concept_embedding"][concept_ids]   # [B, H]
        ctx_feat = concept_context @ w_ctx + b_ctx                   # [B, H]
    else:
        ctx_feat = jnp.zeros((B, H), hidden_states.dtype)            # no-op add

    w_r, b_r = params["reasoning"]
    w_o, b_o = params["output"]

    if compute_dtype is not None:
        # bf16 activations/weights for the MXU-native path on v6e/v7x;
        # biases and accumulation stay in f32.
        hidden_states = hidden_states.astype(compute_dtype)
        ctx_feat = ctx_feat.astype(compute_dtype)
        w_r = w_r.astype(compute_dtype)
        w_o = w_o.astype(compute_dtype)

    return reasoning_fused(hidden_states, ctx_feat, w_r, b_r, w_o, b_o,
                           tm=tm, tn=tn)


# Pure-JAX reference for correctness check.
def reference_forward(params, input_ids, concept_ids):
    emb = params["token_embedding"]
    hidden = emb[input_ids]
    if concept_ids is not None:
        w_c, b_c = params["context"]
        ctx = params["concept_embedding"][concept_ids]
        ctx_f = ctx @ w_c + b_c
        hidden = hidden + ctx_f[:, None, :]
    w_r, b_r = params["reasoning"]
    reasoning = hidden @ w_r + b_r
    w_o, b_o = params["output"]
    logits = reasoning @ w_o + b_o
    return logits, reasoning


if __name__ == "__main__":
    B, S, H, V = 2, 8, 128, 256
    NUM_CONCEPTS = 10000

    key = jax.random.PRNGKey(0)
    k_par, k_ids, k_cid = jax.random.split(key, 3)

    params = make_params(k_par, V, H, NUM_CONCEPTS)
    input_ids = jax.random.randint(k_ids, (B, S), 0, V, dtype=jnp.int32)
    concept_ids = jax.random.randint(k_cid, (B,), 0, NUM_CONCEPTS,
                                     dtype=jnp.int32)

    fwd = jax.jit(common_sense_reasoning_forward)

    # --- with concepts (context path) ---
    logits, reasoning = fwd(params, input_ids, concept_ids)
    jax.block_until_ready((logits, reasoning))
    ref_logits, ref_reasoning = reference_forward(params, input_ids, concept_ids)
    assert logits.shape == (B, S, V) and reasoning.shape == (B, S, H)
    assert jnp.allclose(logits, ref_logits, atol=1e-4, rtol=1e-4)
    assert jnp.allclose(reasoning, ref_reasoning, atol=1e-4, rtol=1e-4)

    # --- without concepts (context is None) ---
    logits2, reasoning2 = fwd(params, input_ids, None)
    jax.block_until_ready((logits2, reasoning2))
    ref_logits2, ref_reasoning2 = reference_forward(params, input_ids, None)
    assert jnp.allclose(logits2, ref_logits2, atol=1e-4, rtol=1e-4)
    assert jnp.allclose(reasoning2, ref_reasoning2, atol=1e-4, rtol=1e-4)

    # --- bf16 compute path (MXU-native on v6e/v7x); run-only sanity check ---
    fwd_bf16 = jax.jit(functools.partial(common_sense_reasoning_forward,
                                         compute_dtype=jnp.bfloat16))
    lg_bf16, rs_bf16 = fwd_bf16(params, input_ids, concept_ids)
    jax.block_until_ready((lg_bf16, rs_bf16))
    assert lg_bf16.shape == (B, S, V) and lg_bf16.dtype == jnp.bfloat16
    assert rs_bf16.shape == (B, S, H)

    print("KERNEL_OK")
</pallas_src>

<mosaic_0001>
module attributes {stable_mosaic.version = 11 : i64} {
  func.func @_reasoning_kernel(%arg0: i32, %arg1: i32, %arg2: i32, %arg3: memref<1x8x128xf32, #tpu.memory_space<vmem>>, %arg4: memref<1x1x128xf32, #tpu.memory_space<vmem>>, %arg5: memref<128x128xf32, #tpu.memory_space<vmem>>, %arg6: memref<1x128xf32, #tpu.memory_space<vmem>>, %arg7: memref<128x256xf32, #tpu.memory_space<vmem>>, %arg8: memref<1x256xf32, #tpu.memory_space<vmem>>, %arg9: memref<1x8x256xf32, #tpu.memory_space<vmem>>, %arg10: memref<1x8x128xf32, #tpu.memory_space<vmem>>, %arg11: memref<8x128xf32, #tpu.memory_space<vmem>>) attributes {dimension_semantics = [#tpu.dimension_semantics<parallel>, #tpu.dimension_semantics<parallel>, #tpu.dimension_semantics<arbitrary>], iteration_bounds = array<i64: 2, 1, 1>, scalar_prefetch = 0 : i64, scratch_operands = 1 : i64, tpu.core_type = #tpu.core_type<tc>, window_params = [{transform_indices = @transform_0, window_bounds = array<i64: 1, 8, 128>}, {transform_indices = @transform_1, window_bounds = array<i64: 1, 1, 128>}, {pipeline_mode = #tpu.pipeline_mode<synchronous>, transform_indices = @transform_2, window_bounds = array<i64: 128, 128>}, {pipeline_mode = #tpu.pipeline_mode<synchronous>, transform_indices = @transform_3, window_bounds = array<i64: 1, 128>}, {transform_indices = @transform_4, window_bounds = array<i64: 128, 256>}, {transform_indices = @transform_5, window_bounds = array<i64: 1, 256>}, {transform_indices = @transform_6, window_bounds = array<i64: 1, 8, 256>}, {transform_indices = @transform_7, window_bounds = array<i64: 1, 8, 128>}]} {
    %c0_i32 = arith.constant 0 : i32
    %0 = arith.cmpi eq, %arg2, %c0_i32 : i32
    %1 = arith.extui %0 : i1 to i32
    %c0_i32_0 = arith.constant 0 : i32
    %2 = arith.cmpi ne, %1, %c0_i32_0 : i32
    scf.if %2 {
      %c0_9 = arith.constant 0 : index
      %c0_10 = arith.constant 0 : index
      %c0_11 = arith.constant 0 : index
      %12 = vector.load %arg3[%c0_9, %c0_10, %c0_11] : memref<1x8x128xf32, #tpu.memory_space<vmem>>, vector<1x8x128xf32>
      %13 = vector.shape_cast %12 : vector<1x8x128xf32> to vector<8x128xf32>
      %c0_12 = arith.constant 0 : index
      %c0_13 = arith.constant 0 : index
      %c0_14 = arith.constant 0 : index
      %14 = vector.load %arg4[%c0_12, %c0_13, %c0_14] : memref<1x1x128xf32, #tpu.memory_space<vmem>>, vector<1x1x128xf32>
      %15 = vector.shape_cast %14 : vector<1x1x128xf32> to vector<1x128xf32>
      %16 = vector.broadcast %15 : vector<1x128xf32> to vector<8x128xf32>
      %17 = arith.addf %13, %16 : vector<8x128xf32>
      %c0_15 = arith.constant 0 : index
      %c0_16 = arith.constant 0 : index
      %18 = vector.load %arg5[%c0_15, %c0_16] : memref<128x128xf32, #tpu.memory_space<vmem>>, vector<128x128xf32>
      %cst_17 = arith.constant dense<0.000000e+00> : vector<8x128xf32>
      %19 = tpu.matmul %17, %18, %cst_17 {dimension_numbers = #tpu.dot_dimension_numbers<[1], [0], [0], [1], [0, 0, 1, 1], [], []>} : vector<8x128xf32>, vector<128x128xf32>, vector<8x128xf32> -> vector<8x128xf32>
      %c0_18 = arith.constant 0 : index
      %c0_19 = arith.constant 0 : index
      %20 = vector.load %arg6[%c0_18, %c0_19] : memref<1x128xf32, #tpu.memory_space<vmem>>, vector<1x128xf32>
      %21 = vector.broadcast %20 : vector<1x128xf32> to vector<8x128xf32>
      %22 = arith.addf %19, %21 : vector<8x128xf32>
      %c0_20 = arith.constant 0 : index
      %c0_21 = arith.constant 0 : index
      %23 = vector.load %arg11[%c0_20, %c0_21] : memref<8x128xf32, #tpu.memory_space<vmem>>, vector<8x128xf32>
      tpu.vector_store %arg11[%c0_20, %c0_21], %22 {strides = array<i32>} : memref<8x128xf32, #tpu.memory_space<vmem>>, vector<8x128xf32>,
      %c0_22 = arith.constant 0 : index
      %c0_23 = arith.constant 0 : index
      %c0_24 = arith.constant 0 : index
      %24 = vector.load %arg10[%c0_22, %c0_23, %c0_24] : memref<1x8x128xf32, #tpu.memory_space<vmem>>, vector<1x8x128xf32>
      %25 = vector.shape_cast %24 : vector<1x8x128xf32> to vector<8x128xf32>
      %26 = vector.shape_cast %22 : vector<8x128xf32> to vector<1x8x128xf32>
      tpu.vector_store %arg10[%c0_22, %c0_23, %c0_24], %26 {strides = array<i32>} : memref<1x8x128xf32, #tpu.memory_space<vmem>>, vector<1x8x128xf32>,
    } else {
    }
    %c0 = arith.constant 0 : index
    %c0_1 = arith.constant 0 : index
    %3 = vector.load %arg11[%c0, %c0_1] : memref<8x128xf32, #tpu.memory_space<vmem>>, vector<8x128xf32>
    %c0_2 = arith.constant 0 : index
    %c0_3 = arith.constant 0 : index
    %4 = vector.load %arg7[%c0_2, %c0_3] : memref<128x256xf32, #tpu.memory_space<vmem>>, vector<128x256xf32>
    %cst = arith.constant dense<0.000000e+00> : vector<8x256xf32>
    %5 = tpu.matmul %3, %4, %cst {dimension_numbers = #tpu.dot_dimension_numbers<[1], [0], [0], [1], [0, 0, 1, 1], [], []>} : vector<8x128xf32>, vector<128x256xf32>, vector<8x256xf32> -> vector<8x256xf32>
    %c0_4 = arith.constant 0 : index
    %c0_5 = arith.constant 0 : index
    %6 = vector.load %arg8[%c0_4, %c0_5] : memref<1x256xf32, #tpu.memory_space<vmem>>, vector<1x256xf32>
    %7 = vector.broadcast %6 : vector<1x256xf32> to vector<8x256xf32>
    %8 = arith.addf %5, %7 : vector<8x256xf32>
    %c0_6 = arith.constant 0 : index
    %c0_7 = arith.constant 0 : index
    %c0_8 = arith.constant 0 : index
    %9 = vector.load %arg9[%c0_6, %c0_7, %c0_8] : memref<1x8x256xf32, #tpu.memory_space<vmem>>, vector<1x8x256xf32>
    %10 = vector.shape_cast %9 : vector<1x8x256xf32> to vector<8x256xf32>
    %11 = vector.shape_cast %8 : vector<8x256xf32> to vector<1x8x256xf32>
    tpu.vector_store %arg9[%c0_6, %c0_7, %c0_8], %11 {strides = array<i32>} : memref<1x8x256xf32, #tpu.memory_space<vmem>>, vector<1x8x256xf32>,
    return
  }
  func.func @transform_0(%arg0: i32, %arg1: i32, %arg2: i32) -> (i32, i32, i32) {
    %c0_i32 = arith.constant 0 : i32
    %c0_i32_0 = arith.constant 0 : i32
    return %arg0, %arg1, %c0_i32 : i32, i32, i32
  }
  func.func @transform_1(%arg0: i32, %arg1: i32, %arg2: i32) -> (i32, i32, i32) {
    %c0_i32 = arith.constant 0 : i32
    %c0_i32_0 = arith.constant 0 : i32
    %c0_i32_1 = arith.constant 0 : i32
    return %arg0, %c0_i32, %c0_i32_0 : i32, i32, i32
  }
  func.func @transform_2(%arg0: i32, %arg1: i32, %arg2: i32) -> (i32, i32) {
    %c0_i32 = arith.constant 0 : i32
    %c0_i32_0 = arith.constant 0 : i32
    %c0_i32_1 = arith.constant 0 : i32
    return %c0_i32, %c0_i32_0 : i32, i32
  }
  func.func @transform_3(%arg0: i32, %arg1: i32, %arg2: i32) -> (i32, i32) {
    %c0_i32 = arith.constant 0 : i32
    %c0_i32_0 = arith.constant 0 : i32
    %c0_i32_1 = arith.constant 0 : i32
    return %c0_i32, %c0_i32_0 : i32, i32
  }
  func.func @transform_4(%arg0: i32, %arg1: i32, %arg2: i32) -> (i32, i32) {
    %c0_i32 = arith.constant 0 : i32
    %c0_i32_0 = arith.constant 0 : i32
    return %c0_i32, %arg2 : i32, i32
  }
  func.func @transform_5(%arg0: i32, %arg1: i32, %arg2: i32) -> (i32, i32) {
    %c0_i32 = arith.constant 0 : i32
    %c0_i32_0 = arith.constant 0 : i32
    return %c0_i32, %arg2 : i32, i32
  }
  func.func @transform_6(%arg0: i32, %arg1: i32, %arg2: i32) -> (i32, i32, i32) {
    %c0_i32 = arith.constant 0 : i32
    return %arg0, %arg1, %arg2 : i32, i32, i32
  }
  func.func @transform_7(%arg0: i32, %arg1: i32, %arg2: i32) -> (i32, i32, i32) {
    %c0_i32 = arith.constant 0 : i32
    %c0_i32_0 = arith.constant 0 : i32
    return %arg0, %arg1, %c0_i32 : i32, i32, i32
  }
}

</mosaic_0001>

<bundles_post_ra>
// kernel: common_sense_reasoning_forward.1
= control target key start
LH: loop header
LB: loop body
LE: loop exit
PB: predicated region body
PF: predicated region fallthrough
CT: control target
= control target key end

     0   :  { %s1642_s0 = inlined_call_operand.vmem [shape: f32[2,8,128], index: 0, kind: input, shape index: {}]   ;;  %s1643_s1 = inlined_call_operand.vmem [shape: f32[2,1,128], index: 1, kind: input, shape index: {}]   ;;  %s1644_s2 = inlined_call_operand.hbm [shape: f32[128,128], index: 2, kind: input, shape index: {}]   ;;  %s1645_s3 = inlined_call_operand.hbm [shape: f32[1,128], index: 3, kind: input, shape index: {}]   ;;  %s1646_s4 = inlined_call_operand.hbm [shape: f32[128,256], index: 4, kind: input, shape index: {}]   ;;  %s1647_s5 = inlined_call_operand.hbm [shape: f32[1,256], index: 5, kind: input, shape index: {}]   ;;  %s1648_s6 = inlined_call_operand.hbm [shape: f32[2,8,256], index: 6, kind: output, shape index: {0}]   ;;  %s1649_s7 = inlined_call_operand.hbm [shape: f32[2,8,128], index: 7, kind: output, shape index: {1}]  }
   0x1   :  { %1657 = sst [smem:[#allocation23_spill]] %s1645_s3 }
   0x2   :  { %13 = vsyncpa [#allocation4], 0 }
   0x3   :  { %14 = vsyncpa [#allocation7], 0 }
   0x4   :  { %15 = vsyncpa [#allocation10], 0 }
   0x5   :  { %16 = vsyncpa [#allocation5], 0 }
   0x6   :  { %18 = vsyncpa [#allocation5 + $0x1], 0 }
   0x7   :  { %19 = vsyncpa [#allocation13], 0 }
   0x8   :  { %21 = vsyncpa [#allocation13 + $0x1], 0  ;;  %s1369_s24 = smov 0   ;;  %s1371_s25 = smov 0  }
   0x9   :  { %s1373_s26 = smov 0   ;;  %s1375_s27 = smov 0  }
   0xa   :  { %s1377_s28 = smov 0   ;;  %s1379_s29 = smov 0  }
   0xb LB: > { %1658 = sst [smem:[#allocation19_spill]] %s1302_s26  ;;  %s838_s30 = sadd.s32 4294967295, %s1314_s29   ;;  %s1314_s29 = sphi %s1379_s29, %s27_s29   ;;  %s1310_s28 = sphi %s1377_s28, %s1676_s28   ;;  %s1306_s27 = sphi %s1375_s27, %s1675_s27   ;;  %s1302_s26 = sphi %s1373_s26, %s1674_s26   ;;  %s1298_s25 = sphi %s1371_s25, %s1678_s25   ;;  %s1294_s24 = sphi %s1369_s24, %s1677_s24  }
   0xc   : > { %1659 = sst [smem:[#allocation20_spill]] %s1310_s28  ;;  %s839_s8 = sadd.s32 4294967294, %s1314_s29  }
   0xd   : > { %s46_s9 = sadd.s32 1, %s1310_s28  ;;  %s205_s10 = sadd.s32 1, %s1302_s26 }
   0xe   : > { %p48_p0 = scmp.ge.s32.totalorder %s46_s9, 2  ;;  %p215_p1 = scmp.ne.s32.totalorder %s1302_s26, %s1298_s25 }
   0xf   : > { %p216_p2 = scmp.eq.s32.totalorder %s838_s30, 1  ;;  %p221_p3 = scmp.ne.s32.totalorder %s1298_s25, %s1294_s24 }
  0x10   : > { %s1680_s9 = smov (%p48_p0, %s46_s9), 0  ;;  %p222_p5 = scmp.eq.s32.totalorder %s839_s8, 1 }
  0x11   : > { %1660 = sst [smem:[#allocation21_spill]] %s1680_s9  ;;  %p1409_p4 = por %p216_p2, %p215_p1 }
  0x12   : > { %s198_s12 = ssub.s32 %s1310_s28, %s1680_s9  ;;  %p840_p6 = scmp.ge.s32.totalorder %s1314_s29, 1 }
  0x13   : > { %s1661_s11 = scalar_select %p1409_p4, 1, 0 }
  0x14   : > { %p203_p7 = scmp.eq.s32.totalorder %s198_s12, 0  ;;  %p1416_p8 = por %p222_p5, %p221_p3 }
  0x15   : > { %p257_p9 = scmp.lt.s32.totalorder %s1314_s29, 3  ;;  %p1428_p11 = scmp.eq.s32.totalorder %s838_s30, 0 }
  0x16   : > { %s1662_s13 = scalar_select %p1416_p8, 1, 0 }
  0x17   : > { %s1422_s14 = scalar_select %p203_p7, %s1302_s26, %s205_s10  }
  0x18   : > { %p1424_p10 = pnand %p840_p6, %p257_p9  ;;  %s1316_s17 = smov [#allocation6]  }
  0x19   : > { %1663 = sst [smem:[#allocation22_spill]] %s1422_s14  ;;  %s283_s18 = sshll.u32 %s1316_s17, 4  ;;  %s284_s18 = int_to_ptr.vmem [resolvable:$true] %s283_s18 }
  0x1a   : > { %s1664_s15 = scalar_select %p1424_p10, 1, 0 }
  0x1b   : > { %s1665_s16 = scalar_select %p1428_p11, 1, 0 }
  0x1c   : > { %p992_p12 = pneg %p1424_p10  ;;  %s1317_s20 = smov [#allocation3]  }
  0x1d   : > { %s269_s21 = sshll.u32 %s1317_s20, 4  ;;  %s1667_s3 = sld [smem:[#allocation23_spill]]  ;;  %s1440_s21 = int_to_ptr.vmem [resolvable:$true] %s269_s21 }
  0x1e   : > { %p1436_p13 = pnand %p1428_p11, %p992_p12 }
  0x20   : > { %p1450_p1 = pneg %p1436_p13 }
  0x23   : > { %s1080_s30 = scalar_lea.hbm %s1667_s3, 16 }
  0x24   : > { %p1081_p0 = scmp.ne.s32.totalorder %s1667_s3, %s1080_s30  ;;  %p1087_p5 = scmp.lt.u32.totalorder %s1080_s30, %s1667_s3 }
  0x26   : > { %p1083_p2 = pnand %p1450_p1, %p1081_p0 }
  0x28   : > { %p1084_p3 = pneg %p1083_p2 }
  0x2a   : > { %p1089_p6 = pnand %p1087_p5, %p1084_p3 }
  0x2c   : > { %1092 = shalt.err (!%p1089_p6)
}
  0x2d   : > { %s1093_s22 = scalar_lea.vmem %s284_s18, 16  ;;  %s1100_s23 = scalar_lea.vmem %s284_s18, 32 }
  0x2e   : > { %p1094_p7 = scmp.ne.s32.totalorder %s284_s18, %s1093_s22  ;;  %p1101_p8 = scmp.lt.s32.totalorder %s284_s18, %s284_s18 }
  0x2f   : > { %p1102_p4 = scmp.lt.s32.totalorder %s1100_s23, %s1093_s22 }
  0x30   : > { %p1096_p9 = pnand %p1094_p7, %p1450_p1 }
  0x31   : > { %p1103_p11 = por %p1102_p4, %p1101_p8 }
  0x32   : > { %p1097_p12 = pneg %p1096_p9 }
  0x34   : > { %p1104_p10 = pnand %p1103_p11, %p1097_p12 }
  0x36   : > { %1107 = shalt.err (!%p1104_p10)
}
  0x37   : > { %998 = dma.hbm_to_vmem [thread:$0]  (!%p1436_p13), %s1667_s3, 16, %s284_s18, [#allocation7]  }
  0x38   : > { %s1108_s20 = scalar_lea.hbm %s1644_s2, 2048 }
  0x39   : > { %p1109_p0 = scmp.ne.s32.totalorder %s1644_s2, %s1108_s20  ;;  %p1115_p8 = scmp.lt.u32.totalorder %s1108_s20, %s1644_s2 }
  0x3b   : > { %p1111_p2 = pnand %p1109_p0, %p1450_p1 }
  0x3d   : > { %p1112_p4 = pneg %p1111_p2 }
  0x3f   : > { %p1117_p10 = pnand %p1115_p8, %p1112_p4 }
  0x41   : > { %1120 = shalt.err (!%p1117_p10)
}
  0x42   : > { %s1121_s18 = scalar_lea.vmem %s1440_s21, 2048  ;;  %p1129_p6 = scmp.lt.s32.totalorder %s1440_s21, %s1440_s21 }
  0x43   : > { %p1122_p11 = scmp.ne.s32.totalorder %s1440_s21, %s1121_s18  ;;  %p1130_p7 = scmp.lt.s32.totalorder %s1121_s18, %s1121_s18 }
  0x45   : > { %p1124_p3 = pnand %p1122_p11, %p1450_p1  ;;  %p1131_p9 = por %p1130_p7, %p1129_p6 }
  0x47   : > { %p1125_p5 = pneg %p1124_p3 }
  0x49   : > { %p1132_p12 = pnand %p1131_p9, %p1125_p5 }
  0x4b   : > { %1135 = shalt.err (!%p1132_p12)
}
  0x4c   : > { %s1318_s28 = smov 128   ;;  %s1319_s9 = smov 8  }
  0x4d   : > { %995 = dma.hbm_to_vmem [thread:$0]  (!%p1436_p13), %s1644_s2, 2048, %s1440_s21, [#allocation4], %s1318_s28, %s1318_s28, %s1319_s9  }
  0x4e   : > { %s1320_s30 = smov [#allocation8]   ;;  %s1136_s23 = scalar_lea.hbm %s1646_s4, 4096 }
  0x4f   : > { %s296_s17 = sshll.u32 %s1320_s30, 4  ;;  %p1137_p0 = scmp.ne.s32.totalorder %s1646_s4, %s1136_s23  ;;  %s297_s17 = int_to_ptr.vmem [resolvable:$true] %s296_s17 }
  0x50   : > { %p1143_p8 = scmp.lt.u32.totalorder %s1136_s23, %s1646_s4 }
  0x51   : > { %p1139_p2 = pnand %p1137_p0, %p1450_p1 }
  0x53   : > { %p1140_p4 = pneg %p1139_p2 }
  0x55   : > { %p1145_p10 = pnand %p1143_p8, %p1140_p4 }
  0x57   : > { %1148 = shalt.err (!%p1145_p10)
}
  0x58   : > { %s1149_s21 = scalar_lea.vmem %s297_s17, 4096  ;;  %p1157_p6 = scmp.lt.s32.totalorder %s297_s17, %s297_s17 }
  0x59   : > { %p1150_p11 = scmp.ne.s32.totalorder %s297_s17, %s1149_s21  ;;  %p1158_p7 = scmp.lt.s32.totalorder %s1149_s21, %s1149_s21 }
  0x5b   : > { %p1152_p3 = pnand %p1150_p11, %p1450_p1  ;;  %p1159_p9 = por %p1158_p7, %p1157_p6 }
  0x5d   : > { %p1153_p5 = pneg %p1152_p3 }
  0x5f   : > { %p1160_p12 = pnand %p1159_p9, %p1153_p5 }
  0x61   : > { %1163 = shalt.err (!%p1160_p12)
}
  0x62   : > { %s1321_s3 = smov 256   ;;  %s1322_s28 = smov 16  }
  0x63   : > { %1001 = dma.hbm_to_vmem [thread:$0]  (!%p1436_p13), %s1646_s4, 4096, %s297_s17, [#allocation7], %s1321_s3, %s1321_s3, %s1322_s28  }
  0x64   : > { %s1323_s9 = smov [#allocation9]   ;;  %s1164_s20 = scalar_lea.hbm %s1647_s5, 32 }
  0x65   : > { %s313_s8 = sshll.u32 %s1323_s9, 4  ;;  %p1165_p0 = scmp.ne.s32.totalorder %s1647_s5, %s1164_s20  ;;  %s314_s8 = int_to_ptr.vmem [resolvable:$true] %s313_s8 }
  0x66   : > { %p1171_p8 = scmp.lt.u32.totalorder %s1164_s20, %s1647_s5 }
  0x67   : > { %p1167_p2 = pnand %p1165_p0, %p1450_p1 }
  0x69   : > { %p1168_p4 = pneg %p1167_p2 }
  0x6b   : > { %p1173_p10 = pnand %p1171_p8, %p1168_p4 }
  0x6d   : > { %1176 = shalt.err (!%p1173_p10)
}
  0x6e   : > { %s1177_s17 = scalar_lea.vmem %s314_s8, 32  ;;  %p1185_p6 = scmp.lt.s32.totalorder %s314_s8, %s314_s8 }
  0x6f   : > { %p1178_p11 = scmp.ne.s32.totalorder %s314_s8, %s1177_s17  ;;  %p1186_p7 = scmp.lt.s32.totalorder %s1177_s17, %s1177_s17 }
  0x71   : > { %p1180_p3 = pnand %p1178_p11, %p1450_p1  ;;  %p1187_p9 = por %p1186_p7, %p1185_p6 }
  0x73   : > { %p1181_p5 = pneg %p1180_p3 }
  0x75   : > { %p1188_p12 = pnand %p1187_p9, %p1181_p5 }
  0x77   : > { %1191 = shalt.err (!%p1188_p12)
}
  0x78   : > { %1004 = dma.hbm_to_vmem [thread:$0]  (!%p1436_p13), %s1647_s5, 32, %s314_s8, [#allocation10]  }
  0x79   : > { %p1669_p0 = scmp.ne.s32.totalorder %s1664_s15, 0 }
  0x7a   : > { %p1670_p2 = scmp.ne.s32.totalorder (!%p1669_p0), %s1665_s16, 0 }
  0x7b   : > { %342 = sbr.rel (%p1669_p0) target bundleno = 613 (0x265), region = 44 }
  0x82   : > { %1273 = dma.done.wait (%p1670_p2), [#allocation4], 2048  }
  0x83   : > { %1275 = vsyncadd (%p1670_p2), [#allocation4], 4294965248 }
  0x84   : > { %1277 = dma.done.wait (%p1670_p2), [#allocation7], 4112  }
  0x85   : > { %1279 = vsyncadd (%p1670_p2), [#allocation7], 4294963184 }
  0x86   : > { %1281 = dma.done.wait (%p1670_p2), [#allocation10], 32  }
  0x87   : > { %1283 = vsyncadd (%p1670_p2), [#allocation10], 4294967264  ;;  %v1324_v0 = vmov 0.0|0.0   ;;  %vm1325_vm0 = vmmov 0   ;;  %v1326_v1 = vmov 0.0   ;;  %v422_v2 = vld [vmem:[#allocation3] sm:$0xff] }
  0x88   : > { %916 = vmatprep.subr.bf16.mxu0 %v1324_v0  ;;  %913 = vmatprep.mubr.msk.f32.mxu0 %vm1325_vm0, %v1326_v1  ;;  %v423_v3 = vld [vmem:[#allocation3 + $0x8] sm:$0xff]  ;;  %v424_v4 = vld [vmem:[#allocation3 + $0x10] sm:$0xff]  ;;  %v425_v6 = vld [vmem:[#allocation3 + $0x18] sm:$0xff]  ;;  %p396_p13 = scmp.lt.s32.totalorder %s1306_s27, 1  ;;  %s1562_s10 = sand.u32 1, %s1298_s25  }
  0x89   : > { %626 = vmatprep.mubr.f32.mxu1 %v1326_v1  ;;  %v917_v5 = vpack.c.bf16 %v423_v3, %v422_v2  ;;  %v920_v7 = vpack.c.bf16 %v425_v6, %v424_v4  ;;  %v426_v8 = vld [vmem:[#allocation3 + $0x20] sm:$0xff]  ;;  %v427_v9 = vld [vmem:[#allocation3 + $0x28] sm:$0xff]  ;;  %v428_v10 = vld [vmem:[#allocation3 + $0x30] sm:$0xff]  ;;  %s852_s30 = sshll.u32 %s1562_s10, 3  ;;  %s860_s22 = sshll.u32 %s1306_s27, 7 }
  0x8a   : > { %v429_v11 = vld [vmem:[#allocation3 + $0x38] sm:$0xff]  ;;  %v519_v12 = vld [vmem:[#allocation8 + $0x8] sm:$0xff]  ;;  %v518_v14 = vld [vmem:[#allocation8] sm:$0xff]  ;;  %v923_v15 = vpack.c.bf16 %v427_v9, %v426_v8  ;;  %s1548_s15 = scalar_select %p396_p13, %s1306_s27, 1 }
  0x8b   : > { %918 = vmatpush3.bf16.msra.mxu0 %v917_v5  ;;  %v521_v13 = vld [vmem:[#allocation8 + $0x18] sm:$0xff]  ;;  %v520_v17 = vld [vmem:[#allocation8 + $0x10] sm:$0xff]  ;;  %v523_v18 = vld [vmem:[#allocation8 + $0x28] sm:$0xff]  ;;  %v926_v27 = vpack.c.bf16 %v429_v11, %v428_v10  ;;  %s395_s20 = scalar_lea.vmem [#allocation12], %s852_s30  ;;  %s1569_s17 = scalar_lea.hbm %s1649_s7, %s860_s22 }
  0x8c   : > { %919 = vmatprep.subr.bf16.mxu0 %v1324_v0  ;;  %v940_v16 = vpack.c.bf16 %v521_v13, %v519_v12  ;;  %v525_v19 = vld [vmem:[#allocation8 + $0x38] sm:$0xff]  ;;  %v942_v20 = vpack.c.bf16 %v520_v17, %v518_v14  ;;  %v522_v22 = vld [vmem:[#allocation8 + $0x20] sm:$0xff]  ;;  %v524_v23 = vld [vmem:[#allocation8 + $0x30] sm:$0xff]  ;;  %s853_s16 = sshll.u32 %s1548_s15, 3  ;;  %s405_s8 = scalar_lea.vmem %s1643_s1, %s1548_s15 }
  0x8d   : > { %v944_v21 = vpack.c.bf16 %v525_v19, %v523_v18  ;;  %v527_v24 = vld [vmem:[#allocation8 + $0x48] sm:$0xff]  ;;  %v529_v25 = vld [vmem:[#allocation8 + $0x58] sm:$0xff]  ;;  %v946_v26 = vpack.c.bf16 %v524_v23, %v522_v22  ;;  %v526_v30 = vld [vmem:[#allocation8 + $0x40] sm:$0xff]  ;;  %s402_s26 = scalar_lea.vmem %s1642_s0, %s853_s16  ;;  %s673_s23 = sshll.u32 %s395_s20, 4  ;;  %s674_s23 = int_to_ptr.vmem [resolvable:$true] %s673_s23 }
  0x8e   : > { %941 = vmatprep.subr.bf16.mxu1 %v940_v16  ;;  %v430_v28 = vld [vmem:[#allocation3 + $0x40] sm:$0xff]  ;;  %v948_v29 = vpack.c.bf16 %v529_v25, %v527_v24  ;;  %v528_v31 = vld [vmem:[#allocation8 + $0x50] sm:$0xff]  ;;  %v431_v32 = vld [vmem:[#allocation3 + $0x48] sm:$0xff]  ;;  %s641_s3 = scalar_lea.sflag [#allocation13], %s1562_s10  ;;  %s1192_s28 = scalar_lea.vmem %s674_s23, 128 }
  0x8f   : > { %921 = vmatpush3.bf16.msra.mxu0 %v920_v7  ;;  %943 = vmatpush1.bf16.msra.mxu1 %v942_v20  ;;  %v531_v33 = vld [vmem:[#allocation8 + $0x68] sm:$0xff]  ;;  %v533_v34 = vld [vmem:[#allocation8 + $0x78] sm:$0xff]  ;;  %v950_v35 = vpack.c.bf16 %v528_v31, %v526_v30  ;;  %v929_v36 = vpack.c.bf16 %v431_v32, %v430_v28  ;;  %v530_v39 = vld [vmem:[#allocation8 + $0x60] sm:$0xff]  ;;  %p1193_p1 = scmp.ne.s32.totalorder %s674_s23, %s1192_s28  ;;  %p1671_p4 = scmp.ne.s32.totalorder %s1661_s11, 0 }
  0x90   : > { %922 = vmatprep.subr.bf16.mxu0 %v1324_v0  ;;  %945 = vmatprep.subr.bf16.mxu1 %v944_v21  ;;  %v432_v37 = vld [vmem:[#allocation3 + $0x50] sm:$0xff]  ;;  %v952_v38 = vpack.c.bf16 %v533_v34, %v531_v33  ;;  %v433_v41 = vld [vmem:[#allocation3 + $0x58] sm:$0xff]  ;;  %v434_v46 = vld [vmem:[#allocation3 + $0x60] sm:$0xff]  ;;  %s1327_s15 = smov [#allocation12]  }
  0x91   : > { %v532_v40 = vld [vmem:[#allocation8 + $0x70] sm:$0xff]  ;;  %v535_v42 = vld [vmem:[#allocation8 + $0x88] sm:$0xff]  ;;  %v537_v43 = vld [vmem:[#allocation8 + $0x98] sm:$0xff]  ;;  %v932_v45 = vpack.c.bf16 %v433_v41, %v432_v37  ;;  %p1194_p8 = pnand %p1193_p1, %p1671_p4  ;;  %s1196_s16 = sshll.u32 %s1327_s15, 4  ;;  %s1197_s16 = int_to_ptr.vmem [resolvable:$false] %s1196_s16 }
  0x92   : > { %v954_v44 = vpack.c.bf16 %v532_v40, %v530_v39  ;;  %v956_v47 = vpack.c.bf16 %v537_v43, %v535_v42  ;;  %v534_v48 = vld [vmem:[#allocation8 + $0x80] sm:$0xff]  ;;  %v536_v49 = vld [vmem:[#allocation8 + $0x90] sm:$0xff]  ;;  %v539_v51 = vld [vmem:[#allocation8 + $0xa8] sm:$0xff]  ;;  %s1198_s19 = scalar_lea.vmem %s1197_s16, 256  ;;  %p1199_p11 = scmp.lt.s32.totalorder %s674_s23, %s1197_s16 }
  0x93   : > { %924 = vmatpush3.bf16.msra.mxu0 %v923_v15  ;;  %947 = vmatpush1.bf16.msra.mxu1 %v946_v26  ;;  %v435_v50 = vld [vmem:[#allocation3 + $0x68] sm:$0xff]  ;;  %v541_v52 = vld [vmem:[#allocation8 + $0xb8] sm:$0xff]  ;;  %v958_v53 = vpack.c.bf16 %v536_v49, %v534_v48  ;;  %v436_v55 = vld [vmem:[#allocation3 + $0x70] sm:$0xff]  ;;  %p1195_p10 = pneg %p1194_p8  ;;  %p1200_p3 = scmp.lt.s32.totalorder %s1198_s19, %s1192_s28 }
  0x94   : > { %925 = vmatprep.subr.bf16.mxu0 %v1324_v0  ;;  %949 = vmatprep.subr.bf16.mxu1 %v948_v29  ;;  %v935_v54 = vpack.c.bf16 %v435_v50, %v434_v46  ;;  %v960_v56 = vpack.c.bf16 %v541_v52, %v539_v51  ;;  %v538_v57 = vld [vmem:[#allocation8 + $0xa0] sm:$0xff]  ;;  %v540_v58 = vld [vmem:[#allocation8 + $0xb0] sm:$0xff]  ;;  %v543_v60 = vld [vmem:[#allocation8 + $0xc8] sm:$0xff] }
  0x95   : > { %v437_v59 = vld [vmem:[#allocation3 + $0x78] sm:$0xff]  ;;  %v413_v62 = vld [vmem:[%s402_s26] sm:$0xff]  ;;  %v962_v63 = vpack.c.bf16 %v540_v58, %v538_v57  ;;  %v547_v6 = vld [vmem:[#allocation8 + $0xe8] sm:$0xff]  ;;  %p1201_p5 = por %p1200_p3, %p1199_p11 }
  0x96   : > { %v545_v61 = vld [vmem:[#allocation8 + $0xd8] sm:$0xff]  ;;  %v938_v1 = vpack.c.bf16 %v437_v59, %v436_v55  ;;  %v542_v4 = vld [vmem:[#allocation8 + $0xc0] sm:$0xff]  ;;  %v544_v5 = vld [vmem:[#allocation8 + $0xd0] sm:$0xff] }
  0x97   : > { %927 = vmatpush3.bf16.msra.mxu0 %v926_v27  ;;  %951 = vmatpush1.bf16.msra.mxu1 %v950_v35  ;;  %v854_v2 = vld [vmem:[%s405_s8] ss:$0 sm:$0xff]  ;;  %v964_v3 = vpack.c.bf16 %v545_v61, %v543_v60  ;;  %v966_v9 = vpack.c.bf16 %v544_v5, %v542_v4  ;;  %v546_v11 = vld [vmem:[#allocation8 + $0xe0] sm:$0xff]  ;;  %v548_v12 = vld [vmem:[#allocation8 + $0xf0] sm:$0xff]  ;;  %p1202_p6 = pnand %p1201_p5, %p1195_p10 }
  0x98   : > { %928 = vmatprep.subr.bf16.mxu0 %v1324_v0  ;;  %953 = vmatprep.subr.bf16.mxu1 %v952_v38  ;;  %v549_v7 = vld [vmem:[#allocation8 + $0xf8] sm:$0xff]  ;;  %v421_v8 = vadd.f32 %v854_v2, %v413_v62  ;;  %v970_v13 = vpack.c.bf16 %v548_v12, %v546_v11 }
  0x99   : > { %v968_v10 = vpack.c.bf16 %v549_v7, %v547_v6 }
  0x9b   : > { %930 = vmatpush3.bf16.msra.mxu0 %v929_v36  ;;  %955 = vmatpush1.bf16.msra.mxu1 %v954_v44 }
  0x9c   : > { %931 = vmatprep.subr.bf16.mxu0 %v1324_v0  ;;  %957 = vmatprep.subr.bf16.mxu1 %v956_v47 }
  0x9f   : > { %933 = vmatpush3.bf16.msra.mxu0 %v932_v45  ;;  %959 = vmatpush1.bf16.msra.mxu1 %v958_v53 }
  0xa0   : > { %934 = vmatprep.subr.bf16.mxu0 %v1324_v0  ;;  %961 = vmatprep.subr.bf16.mxu1 %v960_v56 }
  0xa3   : > { %936 = vmatpush3.bf16.msra.mxu0 %v935_v54  ;;  %963 = vmatpush1.bf16.msra.mxu1 %v962_v63 }
  0xa4   : > { %937 = vmatprep.subr.bf16.mxu0 %v1324_v0  ;;  %965 = vmatprep.subr.bf16.mxu1 %v964_v3  ;;  %v855_v0 = vld [vmem:[#allocation6] ss:$0 sm:$0xff] }
  0xa7   : > { %939 = vmatpush3.bf16.msra.mxu0 %v938_v1  ;;  %967 = vmatpush1.bf16.msra.mxu1 %v966_v9 }
  0xa8   : > { %969 = vmatprep.subr.bf16.mxu1 %v968_v10 }
  0xaa   : > { %914 = vmatmul.mubr.f32.vlgmr.msra.gmra.mrb[0].mxu0 %v421_v8 }
  0xab   : > { %971 = vmatpush1.bf16.msra.mxu1 %v970_v13 }
 0x17d   : > { %v511_v14 = vpop.f32.mrb[0].mxu0 }
 0x17e   : > { %v512_v15 = vadd.f32 %v855_v0, %v511_v14  ;;  %v915_v16 = vpop.f32.mrb[1].mxu0 }
 0x180   : > { %516 = vst [vmem:[%s395_s20] sm:$0xff] %v512_v15  ;;  %627 = vmatmul.mubr.f32.vlgmr.msra.gmra.mrb[0].mxu1 %v512_v15 }
 0x181   : > { %1205 = shalt.err (!%p1202_p6)
}
 0x182   : > { %s1206_s12 = scalar_lea.hbm %s1569_s17, 128  ;;  %s1210_s9 = scalar_lea.hbm %s1649_s7, 256 }
 0x183   : > { %p1207_p7 = scmp.ne.s32.totalorder %s1569_s17, %s1206_s12  ;;  %p1211_p0 = scmp.lt.u32.totalorder %s1569_s17, %s1649_s7 }
 0x184   : > { %p1212_p2 = scmp.lt.u32.totalorder %s1210_s9, %s1206_s12  ;;  %p1214_p1 = scmp.lt.u32.totalorder %s1206_s12, %s1569_s17 }
 0x185   : > { %p1208_p9 = pnand %p1207_p7, %p1671_p4 }
 0x186   : > { %p1213_p13 = por %p1212_p2, %p1211_p0 }
 0x187   : > { %p1209_p12 = pneg %p1208_p9 }
 0x188   : > { %p1215_p8 = por %p1214_p1, %p1213_p13 }
 0x18a   : > { %p1216_p10 = pnand %p1215_p8, %p1209_p12 }
 0x18c   : > { %1219 = shalt.err (!%p1216_p10)
}
 0x18d   : > { %989 = dma.vmem_to_hbm [thread:$0]  (%p1671_p4), %s674_s23, 128, %s1569_s17, %s641_s3   ;;  %v552_v17 = vlaneseq  ;;  %v550_v20 = vld [vmem:[#allocation9] sm:$0x3] }
 0x18e   : > { %s851_s20 = sshll.u32 %s1562_s10, 4  ;;  %s863_s22 = sshll.u32 %s1306_s27, 8 }
 0x18f   : > { %v553_v18 = vshrl.u32 %v552_v17, 7  ;;  %s388_s18 = scalar_lea.vmem [#allocation11], %s851_s20  ;;  %s1594_s23 = scalar_lea.hbm %s1648_s6, %s863_s22 }
 0x190   : > { %s659_s21 = sshll.u32 %s388_s18, 4  ;;  %s636_s17 = scalar_lea.sflag [#allocation5], %s1562_s10  ;;  %s1596_s21 = int_to_ptr.vmem [resolvable:$true] %s659_s21 }
 0x191   : > { %v554_v19 = vsub.s32 0, %v553_v18  ;;  %v558_v21 = vsub.s32 1, %v553_v18  ;;  %s1220_s27 = scalar_lea.vmem %s1596_s21, 256  ;;  %s1328_s3 = smov [#allocation11]  }
 0x192   : > { %p1221_p11 = scmp.ne.s32.totalorder %s1596_s21, %s1220_s27  ;;  %s1224_s16 = sshll.u32 %s1328_s3, 4  ;;  %s1225_s16 = int_to_ptr.vmem [resolvable:$false] %s1224_s16 }
 0x193   : > { %v555_v22 = vrot.slane %v550_v20, %v554_v19  ;;  %v559_v23 = vrot.slane %v550_v20, %v558_v21  ;;  %s1226_s19 = scalar_lea.vmem %s1225_s16, 512  ;;  %p1227_p6 = scmp.lt.s32.totalorder %s1596_s21, %s1225_s16 }
 0x194   : > { %p1222_p3 = pnand %p1221_p11, %p1671_p4  ;;  %p1228_p7 = scmp.lt.s32.totalorder %s1226_s19, %s1220_s27 }
 0x196   : > { %p1223_p5 = pneg %p1222_p3  ;;  %p1229_p9 = por %p1228_p7, %p1227_p6 }
 0x198   : > { %p1230_p12 = pnand %p1229_p9, %p1223_p5 }
 0x253   : > { %v628_v24 = vpop.f32.mrb[0].mxu1 }
 0x254   : > { %v629_v25 = vadd.f32 %v628_v24, %v555_v22  ;;  %v630_v26 = vpop.f32.mrb[1].mxu1 }
 0x255   : > { %v631_v27 = vadd.f32 %v630_v26, %v559_v23 }
 0x256   : > { %633 = vst [vmem:[%s388_s18] sm:$0xff] %v629_v25 }
 0x257   : > { %634 = vst [vmem:[%s388_s18 + $0x8] sm:$0xff] %v631_v27 }
 0x258   : > { %1233 = shalt.err (!%p1230_p12)
}
 0x259   : > { %s1234_s10 = scalar_lea.hbm %s1594_s23, 256  ;;  %s1238_s14 = scalar_lea.hbm %s1648_s6, 512 }
 0x25a   : > { %p1235_p0 = scmp.ne.s32.totalorder %s1594_s23, %s1234_s10  ;;  %p1239_p1 = scmp.lt.u32.totalorder %s1594_s23, %s1648_s6 }
 0x25b   : > { %p1240_p8 = scmp.lt.u32.totalorder %s1238_s14, %s1234_s10  ;;  %p1242_p11 = scmp.lt.u32.totalorder %s1234_s10, %s1594_s23 }
 0x25c   : > { %p1236_p2 = pnand %p1235_p0, %p1671_p4 }
 0x25d   : > { %p1241_p10 = por %p1240_p8, %p1239_p1 }
 0x25e   : > { %p1237_p13 = pneg %p1236_p2 }
 0x25f   : > { %p1243_p3 = por %p1242_p11, %p1241_p10 }
 0x261   : > { %p1244_p5 = pnand %p1243_p3, %p1237_p13 }
 0x263   : > { %1247 = shalt.err (!%p1244_p5)
}
 0x264   : > { %988 = dma.vmem_to_hbm [thread:$0]  (%p1671_p4), %s1596_s21, 256, %s1594_s23, %s636_s17  }
 0x265 PF: > { %p1020_p6 = scmp.ge.s32.totalorder %s1314_s29, 2  ;;  %s685_s30 = sand.u32 1, %s1294_s24  }
 0x266   : > { %p1672_p7 = scmp.ne.s32.totalorder %s1662_s13, 0  ;;  %s686_s20 = scalar_lea.sflag [#allocation5], %s685_s30 }
 0x268   : > { %p1006_p9 = pnand %p1020_p6, %p1672_p7 }
 0x26a   : > { %1285 = dma.done.wait (!%p1006_p9), %s686_s20, 256  }
 0x26b   : > { %1287 = vsyncadd (!%p1006_p9), %s686_s20, 4294967040  ;;  %s695_s22 = scalar_lea.sflag [#allocation13], %s685_s30 }
 0x26c   : > { %1289 = dma.done.wait (!%p1006_p9), %s695_s22, 128  }
 0x26d   : > { %1291 = vsyncadd (!%p1006_p9), %s695_s22, 4294967168  ;;  %s27_s29 = sadd.s32 1, %s1314_s29   ;;  %s1673_s11 = sld [smem:[#allocation19_spill]] }
 0x26e   : > { %p24_p12 = scmp.ge.s32.totalorder %s27_s29, 4   ;;  %s1674_s26 = sld [smem:[#allocation22_spill]] }
 0x26f   : > { %s1675_s27 = sld [smem:[#allocation20_spill]]  ;;  %s1676_s28 = sld [smem:[#allocation21_spill]] }
 0x270   : > { %s1677_s24 = smov %s1298_s25  ;;  %26 = sbr.rel (!%p24_p12) target bundleno = 11 (0xb), region = 122 }
 0x273   : > { %s1678_s25 = smov %s1673_s11 }
 0x277   :  { %700 = vsyncpa [#allocation4], 1 }
 0x278   :  { %702 = vsyncpa [#allocation4 + $0x1], 1 }
 0x279   :  { %703 = vsyncpa [#allocation7], 1 }
 0x27a   :  { %704 = vsyncpa [#allocation10], 1 }
 0x27b   :  { %705 = vsyncpa [#allocation5], 1 }
 0x27c   :  { %707 = vsyncpa [#allocation5 + $0x1], 1 }
 0x27d   :  { %708 = vsyncpa [#allocation13], 1 }
 0x27e   :  { %710 = vsyncpa [#allocation13 + $0x1], 1 }

</bundles_post_ra>
